<compile_context>
chip_gen: v5e
topology: v5e:2x2
jax: 0.10.0
libtpu: 0.0.40
codegen_flags: <defaults>
</compile_context>

<pallas_src>
import functools

import jax
import jax.numpy as jnp
from jax.experimental import pallas as pl
from jax.experimental.pallas import tpu as pltpu


def _round_up(x, m):
    return ((x + m - 1) // m) * m


# ----------------------------------------------------------------------------
# Fused kernel: one grid step == one linear layer (+ ReLU except on the last).
# The activation is resident in o_ref (same output block across the grid).
# ----------------------------------------------------------------------------
def _fused_mlp_kernel(x_ref, w_ref, b_ref, o_ref):
    layer = pl.program_id(0)
    n_layers = pl.num_programs(0)

    # Load the (already padded) input into the resident activation buffer once.
    @pl.when(layer == 0)
    def _():
        o_ref[...] = x_ref[...]

    h_bf16 = o_ref[...].astype(jnp.bfloat16)              # MXU-native inputs
    acc = jnp.dot(h_bf16, w_ref[...],                     # (Bp, Wp) @ (Wp, Wp)
                  preferred_element_type=jnp.float32)     # f32 accumulation
    acc = acc + b_ref[...]                                 # bias in f32 (VPU)

    @pl.when(layer < n_layers - 1)
    def _():
        o_ref[...] = jnp.maximum(acc, 0.0)                 # ReLU, stays resident

    @pl.when(layer == n_layers - 1)
    def _():
        o_ref[...] = acc                                   # final layer: no ReLU


def fused_mlp(x_pad, w_stack, b_stack):
    """x_pad: (Bp, Wp) f32, w_stack: (L, Wp, Wp) bf16, b_stack: (L, 1, Wp) f32."""
    B_pad, Wp = x_pad.shape
    L = w_stack.shape[0]
    return pl.pallas_call(
        _fused_mlp_kernel,
        out_shape=jax.ShapeDtypeStruct((B_pad, Wp), jnp.float32),
        grid=(L,),
        in_specs=[
            pl.BlockSpec((B_pad, Wp), lambda l: (0, 0)),        # resident input
            pl.BlockSpec((None, Wp, Wp), lambda l: (l, 0, 0)),  # per-layer weight
            pl.BlockSpec((None, 1, Wp), lambda l: (l, 0, 0)),   # per-layer bias
        ],
        out_specs=pl.BlockSpec((B_pad, Wp), lambda l: (0, 0)),  # resident activation
        compiler_params=pltpu.CompilerParams(
            dimension_semantics=("arbitrary",),  # layer axis: sequential, pipelined
        ),
    )(x_pad, w_stack, b_stack)


def _forward_fn(x, w_stack, b_stack, *, input_dim, output_dim, output_shape, wp):
    B = x.shape[0]
    x_flat = x.reshape(B, -1).astype(jnp.float32)
    B_pad = max(8, _round_up(B, 8))                 # f32 sublane tile
    x_pad = jnp.zeros((B_pad, wp), jnp.float32)
    x_pad = x_pad.at[:B, :input_dim].set(x_flat)
    out = fused_mlp(x_pad, w_stack, b_stack)
    out = out[:B, :output_dim]
    return out.reshape(B, output_shape[0], output_shape[1])


# ----------------------------------------------------------------------------
# MLP module (parameters built deterministically in-script).
# ----------------------------------------------------------------------------
class MLPPallas:
    def __init__(self, input_shape, output_shape, hidden_dim=1024, layer_num=4,
                 dropout=0.5, key=None):
        self.input_dim = input_shape[0] * input_shape[1]
        self.output_dim = output_shape[0] * output_shape[1]
        self.output_shape = output_shape
        self.hidden_dim = hidden_dim
        self.dropout = dropout  # TODO(synk): nn.Dropout is identity in eval mode; training-mode dropout masking is not implemented.

        # layer dims: in -> hidden (x layer_num) -> out  (5 linears for layer_num=4)
        dims = [self.input_dim] + [hidden_dim] * layer_num + [self.output_dim]
        key = key if key is not None else jax.random.PRNGKey(0)
        self.params = []
        for din, dout in zip(dims[:-1], dims[1:]):
            key, kw, kb = jax.random.split(key, 3)
            # PyTorch nn.Linear default: U(-1/sqrt(din), 1/sqrt(din))
            bound = 1.0 / float(din) ** 0.5
            w = jax.random.uniform(kw, (din, dout), jnp.float32, -bound, bound)
            b = jax.random.uniform(kb, (dout,), jnp.float32, -bound, bound)
            self.params.append((w, b))

        # Stacked, zero-padded, lane-dense params for the fused kernel.
        self.wp = _round_up(max(dims), 128)
        L = len(self.params)
        w_stack = jnp.zeros((L, self.wp, self.wp), jnp.bfloat16)
        b_stack = jnp.zeros((L, 1, self.wp), jnp.float32)
        for i, (w, b) in enumerate(self.params):
            w_stack = w_stack.at[i, :w.shape[0], :w.shape[1]].set(
                w.astype(jnp.bfloat16))
            b_stack = b_stack.at[i, 0, :b.shape[0]].set(b)
        self.w_stack = w_stack
        self.b_stack = b_stack

        self._forward = jax.jit(functools.partial(
            _forward_fn,
            input_dim=self.input_dim,
            output_dim=self.output_dim,
            output_shape=self.output_shape,
            wp=self.wp))

    def __call__(self, x):
        return self._forward(x, self.w_stack, self.b_stack)


if __name__ == "__main__":
    # Small, TPU-friendly shapes consistent with the module's forward:
    #   input_shape=(4,16) -> input_dim=64, output_shape=(2,8) -> output_dim=16
    B = 2
    input_shape = (4, 16)
    output_shape = (2, 8)
    hidden_dim = 128
    layer_num = 4

    key = jax.random.PRNGKey(0)
    kx, kp = jax.random.split(key)
    x = jax.random.normal(kx, (B, input_shape[0], input_shape[1]), jnp.float32)

    model = MLPPallas(input_shape, output_shape, hidden_dim=hidden_dim,
                      layer_num=layer_num, dropout=0.5, key=kp)

    out = model(x)
    jax.block_until_ready(out)
    assert out.shape == (B, output_shape[0], output_shape[1]), out.shape
    assert out.dtype == jnp.float32

    # Pure-JAX reference with the same bf16-matmul / f32-accumulate recipe.
    h = x.reshape(B, -1).astype(jnp.float32)
    for i, (w, b) in enumerate(model.params):
        a = jnp.dot(h.astype(jnp.bfloat16), w.astype(jnp.bfloat16),
                    preferred_element_type=jnp.float32) + b
        h = a if i == len(model.params) - 1 else jnp.maximum(a, 0.0)
    ref = h.reshape(B, output_shape[0], output_shape[1])
    err = float(jnp.max(jnp.abs(out - ref)))
    assert jnp.allclose(out, ref, atol=2e-3, rtol=2e-3), err

    print("KERNEL_OK")
</pallas_src>

<mosaic_0001>
module attributes {stable_mosaic.version = 11 : i64} {
  func.func @_fused_mlp_kernel(%arg0: i32, %arg1: memref<8x128xf32, #tpu.memory_space<vmem>>, %arg2: memref<1x128x128xbf16, #tpu.memory_space<vmem>>, %arg3: memref<1x1x128xf32, #tpu.memory_space<vmem>>, %arg4: memref<8x128xf32, #tpu.memory_space<vmem>>) attributes {dimension_semantics = [#tpu.dimension_semantics<arbitrary>], iteration_bounds = array<i64: 5>, scalar_prefetch = 0 : i64, scratch_operands = 0 : i64, tpu.core_type = #tpu.core_type<tc>, window_params = [{pipeline_mode = #tpu.pipeline_mode<synchronous>, transform_indices = @transform_0, window_bounds = array<i64: 8, 128>}, {transform_indices = @transform_1, window_bounds = array<i64: 1, 128, 128>}, {transform_indices = @transform_2, window_bounds = array<i64: 1, 1, 128>}, {pipeline_mode = #tpu.pipeline_mode<synchronous>, transform_indices = @transform_3, window_bounds = array<i64: 8, 128>}]} {
    %c0_i32 = arith.constant 0 : i32
    %0 = arith.cmpi eq, %arg0, %c0_i32 : i32
    %1 = arith.extui %0 : i1 to i32
    %c0_i32_0 = arith.constant 0 : i32
    %2 = arith.cmpi ne, %1, %c0_i32_0 : i32
    scf.if %2 {
      %c0_11 = arith.constant 0 : index
      %c0_12 = arith.constant 0 : index
      %18 = vector.load %arg1[%c0_11, %c0_12] : memref<8x128xf32, #tpu.memory_space<vmem>>, vector<8x128xf32>
      %c0_13 = arith.constant 0 : index
      %c0_14 = arith.constant 0 : index
      %19 = vector.load %arg4[%c0_13, %c0_14] : memref<8x128xf32, #tpu.memory_space<vmem>>, vector<8x128xf32>
      tpu.vector_store %arg4[%c0_13, %c0_14], %18 {strides = array<i32>} : memref<8x128xf32, #tpu.memory_space<vmem>>, vector<8x128xf32>,
    } else {
    }
    %c0 = arith.constant 0 : index
    %c0_1 = arith.constant 0 : index
    %3 = vector.load %arg4[%c0, %c0_1] : memref<8x128xf32, #tpu.memory_space<vmem>>, vector<8x128xf32>
    %4 = arith.truncf %3 : vector<8x128xf32> to vector<8x128xbf16>
    %c0_2 = arith.constant 0 : index
    %c0_3 = arith.constant 0 : index
    %c0_4 = arith.constant 0 : index
    %5 = vector.load %arg2[%c0_2, %c0_3, %c0_4] : memref<1x128x128xbf16, #tpu.memory_space<vmem>>, vector<1x128x128xbf16>
    %6 = vector.shape_cast %5 : vector<1x128x128xbf16> to vector<128x128xbf16>
    %cst = arith.constant dense<0.000000e+00> : vector<8x128xf32>
    %7 = tpu.matmul %4, %6, %cst {dimension_numbers = #tpu.dot_dimension_numbers<[1], [0], [0], [1], [0, 0, 1, 1], [], []>} : vector<8x128xbf16>, vector<128x128xbf16>, vector<8x128xf32> -> vector<8x128xf32>
    %c0_5 = arith.constant 0 : index
    %c0_6 = arith.constant 0 : index
    %c0_7 = arith.constant 0 : index
    %8 = vector.load %arg3[%c0_5, %c0_6, %c0_7] : memref<1x1x128xf32, #tpu.memory_space<vmem>>, vector<1x1x128xf32>
    %9 = vector.shape_cast %8 : vector<1x1x128xf32> to vector<1x128xf32>
    %10 = vector.broadcast %9 : vector<1x128xf32> to vector<8x128xf32>
    %11 = arith.addf %7, %10 : vector<8x128xf32>
    %c4_i32 = arith.constant 4 : i32
    %12 = arith.cmpi slt, %arg0, %c4_i32 : i32
    %13 = arith.extui %12 : i1 to i32
    %c0_i32_8 = arith.constant 0 : i32
    %14 = arith.cmpi ne, %13, %c0_i32_8 : i32
    scf.if %14 {
      %cst_11 = arith.constant 0.000000e+00 : f32
      %18 = vector.broadcast %cst_11 : f32 to vector<8x128xf32>
      %19 = arith.maximumf %11, %18 : vector<8x128xf32>
      %c0_12 = arith.constant 0 : index
      %c0_13 = arith.constant 0 : index
      %20 = vector.load %arg4[%c0_12, %c0_13] : memref<8x128xf32, #tpu.memory_space<vmem>>, vector<8x128xf32>
      tpu.vector_store %arg4[%c0_12, %c0_13], %19 {strides = array<i32>} : memref<8x128xf32, #tpu.memory_space<vmem>>, vector<8x128xf32>,
    } else {
    }
    %c4_i32_9 = arith.constant 4 : i32
    %15 = arith.cmpi eq, %arg0, %c4_i32_9 : i32
    %16 = arith.extui %15 : i1 to i32
    %c0_i32_10 = arith.constant 0 : i32
    %17 = arith.cmpi ne, %16, %c0_i32_10 : i32
    scf.if %17 {
      %c0_11 = arith.constant 0 : index
      %c0_12 = arith.constant 0 : index
      %18 = vector.load %arg4[%c0_11, %c0_12] : memref<8x128xf32, #tpu.memory_space<vmem>>, vector<8x128xf32>
      tpu.vector_store %arg4[%c0_11, %c0_12], %11 {strides = array<i32>} : memref<8x128xf32, #tpu.memory_space<vmem>>, vector<8x128xf32>,
    } else {
    }
    return
  }
  func.func @transform_0(%arg0: i32) -> (i32, i32) {
    %c0_i32 = arith.constant 0 : i32
    %c0_i32_0 = arith.constant 0 : i32
    %c0_i32_1 = arith.constant 0 : i32
    return %c0_i32, %c0_i32_0 : i32, i32
  }
  func.func @transform_1(%arg0: i32) -> (i32, i32, i32) {
    %c0_i32 = arith.constant 0 : i32
    %c0_i32_0 = arith.constant 0 : i32
    %c0_i32_1 = arith.constant 0 : i32
    return %arg0, %c0_i32, %c0_i32_0 : i32, i32, i32
  }
  func.func @transform_2(%arg0: i32) -> (i32, i32, i32) {
    %c0_i32 = arith.constant 0 : i32
    %c0_i32_0 = arith.constant 0 : i32
    %c0_i32_1 = arith.constant 0 : i32
    return %arg0, %c0_i32, %c0_i32_0 : i32, i32, i32
  }
  func.func @transform_3(%arg0: i32) -> (i32, i32) {
    %c0_i32 = arith.constant 0 : i32
    %c0_i32_0 = arith.constant 0 : i32
    %c0_i32_1 = arith.constant 0 : i32
    return %c0_i32, %c0_i32_0 : i32, i32
  }
}

</mosaic_0001>

<bundles_post_ra>
// kernel: _forward_fn.1
= control target key start
LH: loop header
LB: loop body
LE: loop exit
PB: predicated region body
PF: predicated region fallthrough
CT: control target
= control target key end

     0   :  { %8 = vsyncpa [#allocation3], 0  ;;  %s634_s0 = inlined_call_operand.vmem [shape: f32[8,128], index: 0, kind: input, shape index: {}]   ;;  %s635_s1 = inlined_call_operand.hbm [shape: bf16[5,128,128], index: 1, kind: input, shape index: {}]   ;;  %s636_s2 = inlined_call_operand.vmem [shape: f32[5,1,128], index: 2, kind: input, shape index: {}]   ;;  %s637_s3 = inlined_call_operand.vmem [shape: f32[8,128], index: 3, kind: output, shape index: {}]  }
   0x1   :  { %10 = vsyncpa [#allocation3 + $0x1], 0  ;;  %s524_s12 = smov 0   ;;  %s526_s13 = smov 0  }
   0x2   :  { %s528_s14 = smov 0   ;;  %s530_s15 = smov 0  }
   0x3 LB: > { %s543_s16 = sadd.s32 4294967295, %s500_s15   ;;  %s546_s17 = sadd.s32 1, %s500_s15   ;;  %s500_s15 = sphi %s530_s15, %s644_s15   ;;  %s496_s14 = sphi %s528_s14, %s643_s14   ;;  %s492_s13 = sphi %s526_s13, %s642_s13   ;;  %s488_s12 = sphi %s524_s12, %s641_s12  }
   0x4   : > { %s41_s18 = ssub.s32 %s500_s15, %s546_s17  ;;  %s44_s19 = sadd.s32 1, %s496_s14 }
   0x5   : > { %p42_p0 = scmp.eq.s32.totalorder %s41_s18, 0  ;;  %p51_p1 = scmp.ne.s32.totalorder %s496_s14, %s492_s13 }
   0x6   : > { %p52_p2 = scmp.eq.s32.totalorder %s500_s15, 0  ;;  %p57_p3 = scmp.ne.s32.totalorder %s492_s13, %s488_s12 }
   0x7   : > { %s556_s20 = scalar_select %p42_p0, %s496_s14, %s44_s19  }
   0x8   : > { %p558_p4 = por %p52_p2, %p51_p1  ;;  %p58_p5 = scmp.eq.s32.totalorder %s543_s16, 0 }
   0x9   : > { %p400_p6 = scmp.lt.s32.totalorder %s500_s15, 5  ;;  %s131_s23 = sand.u32 1, %s496_s14  }
   0xa   : > { %p564_p7 = por %p58_p5, %p57_p3  ;;  %s343_s24 = sshll.u32 %s131_s23, 6 }
   0xb   : > { %s385_s25 = sshll.u32 %s500_s15, 6  ;;  %s135_s29 = scalar_lea.vmem [#allocation2], %s343_s24 }
   0xc   : > { %s140_s28 = scalar_lea.hbm %s635_s1, %s385_s25  ;;  %s143_s30 = sshll.u32 %s135_s29, 4  ;;  %s144_s30 = int_to_ptr.vmem [resolvable:$true] %s143_s30 }
   0xd   : > { %s141_s4 = sshll.u32 %s140_s28, 4  ;;  %p575_p8 = pnand %p400_p6, %p558_p4  ;;  %s142_s4 = int_to_ptr.hbm [resolvable:$true] %s141_s4 }
   0xe   : > { %p346_p9 = scmp.ge.s32.totalorder %s500_s15, 1  ;;  %s132_s6 = scalar_lea.sflag [#allocation3], %s131_s23 }
   0xf   : > { %s436_s7 = sshra.s32 %s142_s4, 4  ;;  %p440_p11 = pneg %p575_p8  ;;  %s437_s7 = int_to_ptr.hbm [resolvable:$true] %s436_s7 }
  0x10   : > { %s438_s8 = scalar_lea.hbm %s437_s7, 64  ;;  %s443_s11 = scalar_lea.hbm %s635_s1, 320 }
  0x11   : > { %p439_p10 = scmp.ne.s32.totalorder %s437_s7, %s438_s8  ;;  %p444_p0 = scmp.lt.s32.totalorder %s437_s7, %s635_s1 }
  0x12   : > { %p445_p1 = scmp.lt.s32.totalorder %s443_s11, %s438_s8 }
  0x13   : > { %p441_p12 = pnand %p440_p11, %p439_p10 }
  0x14   : > { %p446_p2 = por %p445_p1, %p444_p0 }
  0x15   : > { %p442_p13 = pneg %p441_p12 }
  0x17   : > { %p447_p3 = pnand %p446_p2, %p442_p13 }
  0x19   : > { %450 = shalt.err (!%p447_p3)
}
  0x1a   : > { %s502_s19 = smov 64   ;;  %s503_s21 = smov 4  }
  0x1b   : > { %399 = dma.hbm_to_vmem [thread:$0]  (!%p575_p8), %s142_s4, 1024, %s144_s30, %s132_s6, %s502_s19, %s502_s19, %s503_s21  }
  0x1c   : > { %p157_p4 = scmp.lt.s32.totalorder %s500_s15, 6 }
  0x1e   : > { %p158_p5 = pnand %p346_p9, %p157_p4 }
  0x1f   : > { %s163_s23 = sand.u32 (!%p158_p5), 1, %s492_s13  }
  0x20   : > { %161 = sbr.rel (%p158_p5) target bundleno = 225 (0xe1), region = 32  ;;  %s347_s24 = sshll.u32 (!%p158_p5), %s163_s23, 6 }
  0x21   : > { %s164_s25 = scalar_lea.sflag (!%p158_p5), [#allocation3], %s163_s23  ;;  %s167_s26 = scalar_lea.vmem (!%p158_p5), [#allocation2], %s347_s24 }
  0x25   : > { %483 = dma.done.wait (%p564_p7), %s164_s25, 1024  }
  0x26   : > { %485 = vsyncadd (%p564_p7), %s164_s25, 4294966272  ;;  %p189_p6 = scmp.lt.s32.totalorder %s543_s16, 4  ;;  %p348_p8 = scmp.ne.s32.totalorder %s543_s16, 0 }
  0x28   : > { %s190_s27 = scalar_select %p189_p6, %s543_s16, 4 }
  0x29   : > { %195 = sbr.rel (%p348_p8) target bundleno = 48 (0x30), region = 40 }
  0x2a   : > { %s191_s15 = scalar_lea.vmem %s636_s2, %s190_s27 }
  0x2e   : > { %v196_v0 = vld [vmem:[%s634_s0] sm:$0xff] }
  0x2f   : > { %197 = vst [vmem:[%s637_s3] sm:$0xff] %v196_v0 }
  0x30 PF: > { %v393_v1 = vld [vmem:[%s167_s26 + $0x38] sm:$0xff]  ;;  %v392_v2 = vld [vmem:[%s167_s26 + $0x30] sm:$0xff]  ;;  %v391_v3 = vld [vmem:[%s167_s26 + $0x28] sm:$0xff]  ;;  %p381_p7 = scmp.ge.s32.totalorder %s543_s16, 4 }
  0x31   : > { %268 = vmatpush.bf16.msra.mxu0 %v393_v1  ;;  %v390_v4 = vld [vmem:[%s167_s26 + $0x20] sm:$0xff]  ;;  %v389_v5 = vld [vmem:[%s167_s26 + $0x18] sm:$0xff]  ;;  %v388_v6 = vld [vmem:[%s167_s26 + $0x10] sm:$0xff] }
  0x32   : > { %v387_v7 = vld [vmem:[%s167_s26 + $0x8] sm:$0xff]  ;;  %v386_v8 = vld [vmem:[%s167_s26] sm:$0xff] }
  0x33   : > { %v435_v11 = vld [vmem:[%s191_s15] ss:$0 sm:$0xff] }
  0x35   : > { %269 = vmatpush.bf16.msra.mxu0 %v392_v2 }
  0x36   : > { %v198_v9 = vld [vmem:[%s637_s3] sm:$0xff] }
  0x37   : > { %v199_v10 = vpack.c.bf16 %v198_v9, %v198_v9 }
  0x39   : > { %270 = vmatpush.bf16.msra.mxu0 %v391_v3 }
  0x3d   : > { %271 = vmatpush.bf16.msra.mxu0 %v390_v4 }
  0x41   : > { %272 = vmatpush.bf16.msra.mxu0 %v389_v5 }
  0x45   : > { %273 = vmatpush.bf16.msra.mxu0 %v388_v6 }
  0x49   : > { %274 = vmatpush.bf16.msra.mxu0 %v387_v7 }
  0x4d   : > { %275 = vmatpush.bf16.msra.mxu0 %v386_v8 }
  0x50   : > { %276 = vmatmul.bf16.vlgmr.msra.gmra.mxu0 %v199_v10 }
  0xcd   : > { %v277_v12 = vpop.f32.mrf.mxu0 }
  0xce   : > { %v278_v13 = vadd.f32 %v435_v11, %v277_v12 }
  0xd1   : > { %284 = sbr.rel (%p381_p7) target bundleno = 217 (0xd9), region = 44 }
  0xd5   : > { %v279_v14 = vpop.f32.mrf.mxu0 }
  0xd6   : > { %v285_v15 = vmax.f32 %v278_v13, 0.0 }
  0xd8   : > { %286 = vst [vmem:[%s637_s3] sm:$0xff] %v285_v15 }
  0xd9 PF: > { %p382_p9 = scmp.ne.s32.totalorder %s543_s16, 4 }
  0xdb   : > { %290 = sbr.rel (%p382_p9) target bundleno = 225 (0xe1), region = 48 }
  0xe0   : > { %291 = vst [vmem:[%s637_s3] sm:$0xff] %v278_v13 }
  0xe1 PF: > { %p13_p10 = scmp.ge.s32.totalorder %s546_s17, 7   ;;  %s641_s12 = smov %s492_s13 }
  0xe2   : > { %s642_s13 = smov %s496_s14  ;;  %s643_s14 = smov %s556_s20 }
  0xe3   : > { %s644_s15 = smov %s546_s17  ;;  %15 = sbr.rel (!%p13_p10) target bundleno = 3 (0x3), region = 83 }
  0xe8   :  { %303 = vsyncpa [#allocation3], 1 }
  0xe9   :  { %305 = vsyncpa [#allocation3 + $0x1], 1 }

</bundles_post_ra>
